<compile_context>
chip_gen: v7x
topology: tpu7x:2x2x1
jax: 0.10.0
libtpu: 0.0.40
codegen_flags: <defaults>
</compile_context>

<pallas_src>
import functools
from collections import namedtuple

import jax
import jax.numpy as jnp
from jax.experimental import pallas as pl
from jax.experimental.pallas import tpu as pltpu


LayerSpec = namedtuple("LayerSpec", "stride l_in l_out residual")


def _round_up(x, m):
    return ((x + m - 1) // m) * m


def _pad2(a, rows, cols):
    return jnp.pad(a, ((0, rows - a.shape[0]), (0, cols - a.shape[1])))


# ---------------------------------------------------------------------------
# Fused kernel: for each layer (per row-tile of `nb` whole sequences):
#   1x1 expand (BN0 scale folded, bf16 weights) -> +shift -> ReLU6
#   depthwise k=3, pad=1, stride s (BN1 scale folded) -> +shift -> ReLU6
#   1x1 project (bf16 weights, +bias, final BN folded into last layer)
#   -> optional residual
# Activations never leave VMEM between layers.
# ---------------------------------------------------------------------------
def _mbconv_kernel(*refs, specs, nb):
    n_layers = len(specs)
    x_ref = refs[0]
    o_ref = refs[1 + 6 * n_layers]
    scr_ref = refs[2 + 6 * n_layers]          # scratch for stride>1 subsample

    # (rows, 1) boundary-mask cache: one iota+mod per distinct (rows, l_in),
    # reused across the unrolled layer loop (JAX does not CSE broadcasts).
    mask_cache = {}

    def seq_masks(rows, l):
        key = (rows, l)
        if key not in mask_cache:
            pos = jax.lax.broadcasted_iota(jnp.int32, (rows, 1), 0) % l
            mask_cache[key] = (pos == 0, pos == l - 1)
        return mask_cache[key]

    y = x_ref[...]                            # (nb*L0, Cin_pad) float32
    for li, sp in enumerate(specs):
        w1_ref, t0_ref, wd_ref, t1_ref, w3_ref, b3_ref = \
            refs[1 + 6 * li: 7 + 6 * li]
        rows_in = nb * sp.l_in
        rows_out = nb * sp.l_out
        cep = wd_ref.shape[1]                 # padded expansion channels

        # --- 1x1 expand (BN0 scale pre-folded, bf16 weights) + shift + ReLU6 -
        a = jnp.dot(y.astype(jnp.bfloat16), w1_ref[...],
                    preferred_element_type=jnp.float32)
        a = jnp.minimum(jnp.maximum(a + t0_ref[...], 0.0), 6.0)   # (rows_in, cep)

        # --- depthwise k=3, padding=1 via XLU sublane rolls + boundary masks -
        # Flat layout: row r belongs to sequence r // l_in at position r % l_in.
        # The tile holds whole sequences, so roll wrap-around only ever lands on
        # masked (pos==0 / pos==l_in-1) rows. Accumulate taps to keep the live
        # set small (a, z, one rolled temp).
        is_first, is_last = seq_masks(rows_in, sp.l_in)
        wd = wd_ref[...]                                          # (3, cep), BN1-folded
        z = a * wd[1:2, :]
        prev = pltpu.roll(a, shift=1, axis=0)                     # a[r-1]
        z = z + jnp.where(is_first, 0.0, prev) * wd[0:1, :]
        nxt = pltpu.roll(a, shift=rows_in - 1, axis=0)            # a[r+1]
        z = z + jnp.where(is_last, 0.0, nxt) * wd[2:3, :]

        if sp.stride != 1:
            # Dense depthwise result, then subsample: one store + one strided
            # sublane read (valid because l_in % stride == 0, checked in wrapper,
            # so every sequence starts on a stride-aligned flat row).
            scr_ref[pl.ds(0, rows_in), pl.ds(0, cep)] = z
            z = scr_ref[pl.ds(0, rows_out, stride=sp.stride), pl.ds(0, cep)]

        z = jnp.minimum(jnp.maximum(z + t1_ref[...], 0.0), 6.0)   # (rows_out, cep)

        # --- 1x1 project (bf16 weights) + bias (+ residual) -------------------
        out = jnp.dot(z.astype(jnp.bfloat16), w3_ref[...],
                      preferred_element_type=jnp.float32)
        out = out + b3_ref[...]
        if sp.residual:                       # stride==1 and cin==cout only
            out = out + y
        y = out

    o_ref[...] = y.astype(o_ref.dtype)


def _pick_seqs_per_tile(N, L, l_final, max_cp, budget_bytes, target_rows=512):
    """Sequences per tile: whole sequences, rows a multiple of 8 (or the full
    array), ~target_rows rows per tile if the problem is big enough, bounded by
    a per-tile VMEM budget. Prefers >=2 tiles (megacore / DMA overlap) when the
    problem is small."""
    valid = [d for d in range(1, N + 1)
             if N % d == 0
             and (d == N or ((d * L) % 8 == 0 and (d * l_final) % 8 == 0))]
    if not valid:
        return N
    per_row_bytes = max_cp * 4 * 8            # ~8 live f32 slabs of widest layer
    desired = max(min(target_rows, (N * L) // 2), L)
    nb = valid[0]
    for d in valid:
        if d * L * per_row_bytes > budget_bytes:
            break
        nb = d
        if d * L >= desired:
            break
    return nb


def mbconv_pallas(x_nlc, blocks, *, vmem_limit_bytes=48 * 2 ** 20):
    """x_nlc: (N, L, Cin) float32 -> (N, L_final, C_final) float32."""
    N, L, Cin = x_nlc.shape

    specs = []
    params_flat = []
    ce_pads = []
    flops = 0
    param_bytes = 0
    max_cp = _round_up(Cin, 128)
    l_cur, c_cur = L, Cin
    for p, stride in blocks:
        cin, ce = p["w1"].shape
        cout = p["w3"].shape[1]
        assert cin == c_cur, "channel chain mismatch"
        if stride != 1:
            # Flat stride-s subsample across the batch requires l_in % s == 0.
            assert l_cur % stride == 0, "L must be divisible by stride"
        l_out = (l_cur - 1) // stride + 1                 # k=3, pad=1
        cin_p = _round_up(cin, 128)
        ce_p = _round_up(ce, 128)
        cout_p = _round_up(cout, 128)
        max_cp = max(max_cp, cin_p, ce_p, cout_p)
        ce_pads.append(ce_p)

        # Pad to lane-dense shapes; fold to bf16 for the MXU matmuls.
        w1 = _pad2(p["w1"], cin_p, ce_p).astype(jnp.bfloat16)
        t0 = _pad2(p["t0"], 1, ce_p)
        wd = _pad2(p["wd"], 3, ce_p)
        t1 = _pad2(p["t1"], 1, ce_p)
        w3 = _pad2(p["w3"], ce_p, cout_p).astype(jnp.bfloat16)
        b3 = _pad2(p["b3"], 1, cout_p)
        layer_params = [w1, t0, wd, t1, w3, b3]
        params_flat += layer_params
        param_bytes += sum(a.size * a.dtype.itemsize for a in layer_params)

        # Residual only when shapes match (PyTorch would error otherwise).
        specs.append(LayerSpec(stride, l_cur, l_out,
                               residual=(stride == 1 and cin == cout)))
        flops += 2 * N * l_cur * cin_p * ce_p             # expand matmul
        flops += 6 * N * l_cur * ce_p                     # depthwise taps
        flops += 2 * N * l_out * ce_p * cout_p            # project matmul
        l_cur, c_cur = l_out, cout

    l_final, c_final = l_cur, c_cur
    cin_p0 = _round_up(Cin, 128)
    cfin_p = _round_up(c_final, 128)

    # Row-tile choice (generation-aware via the VMEM budget).
    nb = _pick_seqs_per_tile(N, L, l_final, max_cp,
                             budget_bytes=vmem_limit_bytes // 2)
    grid = (N // nb,)

    # Scratch for the stride>1 dense-then-subsample path: (mult of 8, mult of 128).
    strided = [(nb * sp.l_in, ce_pads[i]) for i, sp in enumerate(specs)
               if sp.stride != 1]
    if strided:
        scr_rows = _round_up(max(r for r, _ in strided), 8)
        scr_cols = max(c for _, c in strided)
    else:
        scr_rows, scr_cols = 8, 128

    # Lane-dense (channel-padded) input slab.
    x_p = jnp.pad(x_nlc, ((0, 0), (0, 0), (0, cin_p0 - Cin))) if cin_p0 > Cin else x_nlc
    x_flat = x_p.reshape(N * L, cin_p0)

    const_map = lambda i: (0, 0)
    in_specs = [pl.BlockSpec((nb * L, cin_p0), lambda i: (i, 0))]
    for arr in params_flat:
        in_specs.append(pl.BlockSpec(arr.shape, const_map))
    out_specs = pl.BlockSpec((nb * l_final, cfin_p), lambda i: (i, 0))

    bytes_accessed = (x_flat.size * 4) + (N * l_final * cfin_p * 4) + param_bytes

    kernel = functools.partial(_mbconv_kernel, specs=tuple(specs), nb=nb)
    out_flat = pl.pallas_call(
        kernel,
        out_shape=jax.ShapeDtypeStruct((N * l_final, cfin_p), jnp.float32),
        grid=grid,
        in_specs=in_specs,
        out_specs=out_specs,
        scratch_shapes=[pltpu.VMEM((scr_rows, scr_cols), jnp.float32)],
        compiler_params=pltpu.CompilerParams(
            dimension_semantics=("parallel",),        # shard tiles across TCs (v7x)
            vmem_limit_bytes=vmem_limit_bytes),
        cost_estimate=pl.CostEstimate(flops=int(flops), transcendentals=0,
                                      bytes_accessed=int(bytes_accessed)),
    )(x_flat, *params_flat)

    return out_flat.reshape(N, l_final, cfin_p)[:, :, :c_final]


# ---------------------------------------------------------------------------
# Deterministic parameter construction (shapes mirror the PyTorch module).
# BN scales are folded into the conv weights here (exact: affine after conv,
# before the ReLU6 nonlinearity).  Padding / bf16 casting happens in the wrapper.
# ---------------------------------------------------------------------------
def _init_bottleneck(key, cin, cout, expansion, eps=1e-5):
    ce = cin * expansion
    ks = jax.random.split(key, 14)
    nrm = lambda k, s, sc=0.1: sc * jax.random.normal(k, s, jnp.float32)

    # conv weights (already transposed to channels-last matmul layout)
    w1 = nrm(ks[0], (cin, ce))        # from torch (ce, cin, 1)
    b1 = nrm(ks[1], (ce,))
    wd = nrm(ks[2], (3, ce))          # from torch depthwise (ce, 1, 3)
    bd = nrm(ks[3], (ce,))
    w3 = nrm(ks[4], (ce, cout))       # from torch (cout, ce, 1)
    b3 = nrm(ks[5], (cout,))

    def bn(kg, kb, km, kv, n):
        g = 1.0 + nrm(kg, (n,))
        b = nrm(kb, (n,))
        m = nrm(km, (n,))
        v = 1.0 + jnp.abs(nrm(kv, (n,)))
        s = g / jnp.sqrt(v + eps)
        return s, b, m

    s0, beta0, m0 = bn(ks[6], ks[7], ks[8], ks[9], ce)
    s1, beta1, m1 = bn(ks[10], ks[11], ks[12], ks[13], ce)

    return {
        "w1": w1 * s0[None, :],                     # BN0 scale folded
        "t0": ((b1 - m0) * s0 + beta0)[None, :],    # BN0 shift (+ conv bias)
        "wd": wd * s1[None, :],                     # BN1 scale folded
        "t1": ((bd - m1) * s1 + beta1)[None, :],    # BN1 shift (+ conv bias)
        "w3": w3,
        "b3": b3[None, :],
    }


def init_mbconv(key, in_ch, out_ch, expansion, layers, eps=1e-5):
    keys = jax.random.split(key, layers + 1)
    blocks = []
    for i in range(layers - 1):                      # stride-1 residual blocks
        blocks.append((_init_bottleneck(keys[i], in_ch, in_ch, expansion), 1))
    blocks.append((_init_bottleneck(keys[layers - 1], in_ch, out_ch, expansion), 2))

    # Final BatchNorm1d(out_ch) of MBConv, folded into the last projection.
    kg, kb, km, kv = jax.random.split(keys[layers], 4)
    gf = 1.0 + 0.1 * jax.random.normal(kg, (out_ch,), jnp.float32)
    bf = 0.1 * jax.random.normal(kb, (out_ch,), jnp.float32)
    mf = 0.1 * jax.random.normal(km, (out_ch,), jnp.float32)
    vf = 1.0 + jnp.abs(0.1 * jax.random.normal(kv, (out_ch,), jnp.float32))
    sf = gf / jnp.sqrt(vf + eps)
    tf = bf - mf * sf
    last_p, last_s = blocks[-1]
    last_p = dict(last_p)
    last_p["w3"] = last_p["w3"] * sf[None, :]
    last_p["b3"] = last_p["b3"] * sf[None, :] + tf[None, :]
    blocks[-1] = (last_p, last_s)
    return blocks


if __name__ == "__main__":
    key = jax.random.PRNGKey(0)
    kx, kp = jax.random.split(key)

    N, Cin, L = 2, 8, 16
    out_ch, expansion, layers = 16, 4, 2

    # PyTorch-convention input (N, C, L); transpose to kernel layout (N, L, C).
    x_ncl = jax.random.normal(kx, (N, Cin, L), jnp.float32)
    x_nlc = jnp.transpose(x_ncl, (0, 2, 1))

    blocks = init_mbconv(kp, Cin, out_ch, expansion, layers)

    y = mbconv_pallas(x_nlc, blocks)
    y = jax.block_until_ready(y)

    assert y.shape == (N, L // 2, out_ch), y.shape
    assert jnp.all(jnp.isfinite(y))
    print("KERNEL_OK")
</pallas_src>

<mosaic_0001>
module attributes {stable_mosaic.version = 11 : i64} {
  func.func @_mbconv_kernel(%arg0: i32, %arg1: memref<16x128xf32, #tpu.memory_space<vmem>>, %arg2: memref<128x128xbf16, #tpu.memory_space<vmem>>, %arg3: memref<1x128xf32, #tpu.memory_space<vmem>>, %arg4: memref<3x128xf32, #tpu.memory_space<vmem>>, %arg5: memref<1x128xf32, #tpu.memory_space<vmem>>, %arg6: memref<128x128xbf16, #tpu.memory_space<vmem>>, %arg7: memref<1x128xf32, #tpu.memory_space<vmem>>, %arg8: memref<128x128xbf16, #tpu.memory_space<vmem>>, %arg9: memref<1x128xf32, #tpu.memory_space<vmem>>, %arg10: memref<3x128xf32, #tpu.memory_space<vmem>>, %arg11: memref<1x128xf32, #tpu.memory_space<vmem>>, %arg12: memref<128x128xbf16, #tpu.memory_space<vmem>>, %arg13: memref<1x128xf32, #tpu.memory_space<vmem>>, %arg14: memref<8x128xf32, #tpu.memory_space<vmem>>, %arg15: memref<16x128xf32, #tpu.memory_space<vmem>>) attributes {dimension_semantics = [#tpu.dimension_semantics<parallel>], iteration_bounds = array<i64: 2>, scalar_prefetch = 0 : i64, scratch_operands = 1 : i64, tpu.core_type = #tpu.core_type<tc>, window_params = [{transform_indices = @transform_0, window_bounds = array<i64: 16, 128>}, {pipeline_mode = #tpu.pipeline_mode<synchronous>, transform_indices = @transform_1, window_bounds = array<i64: 128, 128>}, {pipeline_mode = #tpu.pipeline_mode<synchronous>, transform_indices = @transform_2, window_bounds = array<i64: 1, 128>}, {pipeline_mode = #tpu.pipeline_mode<synchronous>, transform_indices = @transform_3, window_bounds = array<i64: 3, 128>}, {pipeline_mode = #tpu.pipeline_mode<synchronous>, transform_indices = @transform_4, window_bounds = array<i64: 1, 128>}, {pipeline_mode = #tpu.pipeline_mode<synchronous>, transform_indices = @transform_5, window_bounds = array<i64: 128, 128>}, {pipeline_mode = #tpu.pipeline_mode<synchronous>, transform_indices = @transform_6, window_bounds = array<i64: 1, 128>}, {pipeline_mode = #tpu.pipeline_mode<synchronous>, transform_indices = @transform_7, window_bounds = array<i64: 128, 128>}, {pipeline_mode = #tpu.pipeline_mode<synchronous>, transform_indices = @transform_8, window_bounds = array<i64: 1, 128>}, {pipeline_mode = #tpu.pipeline_mode<synchronous>, transform_indices = @transform_9, window_bounds = array<i64: 3, 128>}, {pipeline_mode = #tpu.pipeline_mode<synchronous>, transform_indices = @transform_10, window_bounds = array<i64: 1, 128>}, {pipeline_mode = #tpu.pipeline_mode<synchronous>, transform_indices = @transform_11, window_bounds = array<i64: 128, 128>}, {pipeline_mode = #tpu.pipeline_mode<synchronous>, transform_indices = @transform_12, window_bounds = array<i64: 1, 128>}, {transform_indices = @transform_13, window_bounds = array<i64: 8, 128>}]} {
    %c0 = arith.constant 0 : index
    %c0_0 = arith.constant 0 : index
    %0 = vector.load %arg1[%c0, %c0_0] : memref<16x128xf32, #tpu.memory_space<vmem>>, vector<16x128xf32>
    %1 = arith.truncf %0 : vector<16x128xf32> to vector<16x128xbf16>
    %c0_1 = arith.constant 0 : index
    %c0_2 = arith.constant 0 : index
    %2 = vector.load %arg2[%c0_1, %c0_2] : memref<128x128xbf16, #tpu.memory_space<vmem>>, vector<128x128xbf16>
    %cst = arith.constant dense<0.000000e+00> : vector<16x128xf32>
    %3 = tpu.matmul %1, %2, %cst {dimension_numbers = #tpu.dot_dimension_numbers<[1], [0], [0], [1], [0, 0, 1, 1], [], []>} : vector<16x128xbf16>, vector<128x128xbf16>, vector<16x128xf32> -> vector<16x128xf32>
    %c0_3 = arith.constant 0 : index
    %c0_4 = arith.constant 0 : index
    %4 = vector.load %arg3[%c0_3, %c0_4] : memref<1x128xf32, #tpu.memory_space<vmem>>, vector<1x128xf32>
    %5 = vector.broadcast %4 : vector<1x128xf32> to vector<16x128xf32>
    %6 = arith.addf %3, %5 : vector<16x128xf32>
    %cst_5 = arith.constant 0.000000e+00 : f32
    %7 = vector.broadcast %cst_5 : f32 to vector<16x128xf32>
    %8 = arith.maximumf %6, %7 : vector<16x128xf32>
    %cst_6 = arith.constant 6.000000e+00 : f32
    %9 = vector.broadcast %cst_6 : f32 to vector<16x128xf32>
    %10 = arith.minimumf %8, %9 : vector<16x128xf32>
    %11 = tpu.iota {dimensions = array<i32: 0>} : vector<16x1xi32>
    %c16_i32 = arith.constant 16 : i32
    %c0_i32 = arith.constant 0 : i32
    %12 = arith.cmpi eq, %c16_i32, %c0_i32 : i32
    %c1_i32 = arith.constant 1 : i32
    %13 = arith.select %12, %c1_i32, %c16_i32 : i32
    %14 = vector.broadcast %13 : i32 to vector<16x1xi32>
    %15 = arith.remsi %11, %14 : vector<16x1xi32>
    %c0_i32_7 = arith.constant 0 : i32
    %16 = vector.broadcast %c0_i32_7 : i32 to vector<16x1xi32>
    %17 = arith.cmpi ne, %15, %16 : vector<16x1xi32>
    %c0_i32_8 = arith.constant 0 : i32
    %18 = vector.broadcast %c0_i32_8 : i32 to vector<16x1xi32>
    %19 = arith.cmpi slt, %15, %18 : vector<16x1xi32>
    %c0_i32_9 = arith.constant 0 : i32
    %20 = arith.cmpi slt, %13, %c0_i32_9 : i32
    %21 = vector.broadcast %20 : i1 to vector<16x1xi1>
    %22 = vector.broadcast %21 : vector<16x1xi1> to vector<16x1xi1>
    %23 = arith.xori %19, %22 : vector<16x1xi1>
    %24 = arith.andi %23, %17 : vector<16x1xi1>
    %25 = vector.broadcast %13 : i32 to vector<16x1xi32>
    %26 = arith.addi %15, %25 : vector<16x1xi32>
    %27 = arith.select %24, %26, %15 : vector<16x1xi1>, vector<16x1xi32>
    %c0_i32_10 = arith.constant 0 : i32
    %28 = vector.broadcast %c0_i32_10 : i32 to vector<16x1xi32>
    %29 = arith.cmpi eq, %27, %28 : vector<16x1xi32>
    %c15_i32 = arith.constant 15 : i32
    %30 = vector.broadcast %c15_i32 : i32 to vector<16x1xi32>
    %31 = arith.cmpi eq, %27, %30 : vector<16x1xi32>
    %c0_11 = arith.constant 0 : index
    %c0_12 = arith.constant 0 : index
    %32 = vector.load %arg4[%c0_11, %c0_12] : memref<3x128xf32, #tpu.memory_space<vmem>>, vector<3x128xf32>
    %33 = vector.extract_strided_slice %32 {offsets = [1, 0], sizes = [1, 128], strides = [1, 1]} : vector<3x128xf32> to vector<1x128xf32>
    %34 = vector.broadcast %33 : vector<1x128xf32> to vector<16x128xf32>
    %35 = arith.mulf %10, %34 : vector<16x128xf32>
    %c1_i32_13 = arith.constant 1 : i32
    %36 = tpu.dynamic_rotate %10 by %c1_i32_13 dim 0 : vector<16x128xf32>, i32 -> vector<16x128xf32>
    %cst_14 = arith.constant 0.000000e+00 : f32
    %37 = vector.shape_cast %29 : vector<16x1xi1> to vector<16x1xi1>
    %38 = vector.broadcast %37 : vector<16x1xi1> to vector<16x128xi1>
    %39 = vector.broadcast %cst_14 : f32 to vector<16x128xf32>
    %40 = arith.select %38, %39, %36 : vector<16x128xi1>, vector<16x128xf32>
    %41 = vector.extract_strided_slice %32 {offsets = [0, 0], sizes = [1, 128], strides = [1, 1]} : vector<3x128xf32> to vector<1x128xf32>
    %42 = vector.broadcast %41 : vector<1x128xf32> to vector<16x128xf32>
    %43 = arith.mulf %40, %42 : vector<16x128xf32>
    %44 = arith.addf %35, %43 : vector<16x128xf32>
    %c15_i32_15 = arith.constant 15 : i32
    %45 = tpu.dynamic_rotate %10 by %c15_i32_15 dim 0 : vector<16x128xf32>, i32 -> vector<16x128xf32>
    %cst_16 = arith.constant 0.000000e+00 : f32
    %46 = vector.shape_cast %31 : vector<16x1xi1> to vector<16x1xi1>
    %47 = vector.broadcast %46 : vector<16x1xi1> to vector<16x128xi1>
    %48 = vector.broadcast %cst_16 : f32 to vector<16x128xf32>
    %49 = arith.select %47, %48, %45 : vector<16x128xi1>, vector<16x128xf32>
    %50 = vector.extract_strided_slice %32 {offsets = [2, 0], sizes = [1, 128], strides = [1, 1]} : vector<3x128xf32> to vector<1x128xf32>
    %51 = vector.broadcast %50 : vector<1x128xf32> to vector<16x128xf32>
    %52 = arith.mulf %49, %51 : vector<16x128xf32>
    %53 = arith.addf %44, %52 : vector<16x128xf32>
    %c0_17 = arith.constant 0 : index
    %c0_18 = arith.constant 0 : index
    %54 = vector.load %arg5[%c0_17, %c0_18] : memref<1x128xf32, #tpu.memory_space<vmem>>, vector<1x128xf32>
    %55 = vector.broadcast %54 : vector<1x128xf32> to vector<16x128xf32>
    %56 = arith.addf %53, %55 : vector<16x128xf32>
    %cst_19 = arith.constant 0.000000e+00 : f32
    %57 = vector.broadcast %cst_19 : f32 to vector<16x128xf32>
    %58 = arith.maximumf %56, %57 : vector<16x128xf32>
    %cst_20 = arith.constant 6.000000e+00 : f32
    %59 = vector.broadcast %cst_20 : f32 to vector<16x128xf32>
    %60 = arith.minimumf %58, %59 : vector<16x128xf32>
    %61 = arith.truncf %60 : vector<16x128xf32> to vector<16x128xbf16>
    %c0_21 = arith.constant 0 : index
    %c0_22 = arith.constant 0 : index
    %62 = vector.load %arg6[%c0_21, %c0_22] : memref<128x128xbf16, #tpu.memory_space<vmem>>, vector<128x128xbf16>
    %cst_23 = arith.constant dense<0.000000e+00> : vector<16x128xf32>
    %63 = tpu.matmul %61, %62, %cst_23 {dimension_numbers = #tpu.dot_dimension_numbers<[1], [0], [0], [1], [0, 0, 1, 1], [], []>} : vector<16x128xbf16>, vector<128x128xbf16>, vector<16x128xf32> -> vector<16x128xf32>
    %c0_24 = arith.constant 0 : index
    %c0_25 = arith.constant 0 : index
    %64 = vector.load %arg7[%c0_24, %c0_25] : memref<1x128xf32, #tpu.memory_space<vmem>>, vector<1x128xf32>
    %65 = vector.broadcast %64 : vector<1x128xf32> to vector<16x128xf32>
    %66 = arith.addf %63, %65 : vector<16x128xf32>
    %67 = arith.addf %66, %0 : vector<16x128xf32>
    %68 = arith.truncf %67 : vector<16x128xf32> to vector<16x128xbf16>
    %c0_26 = arith.constant 0 : index
    %c0_27 = arith.constant 0 : index
    %69 = vector.load %arg8[%c0_26, %c0_27] : memref<128x128xbf16, #tpu.memory_space<vmem>>, vector<128x128xbf16>
    %cst_28 = arith.constant dense<0.000000e+00> : vector<16x128xf32>
    %70 = tpu.matmul %68, %69, %cst_28 {dimension_numbers = #tpu.dot_dimension_numbers<[1], [0], [0], [1], [0, 0, 1, 1], [], []>} : vector<16x128xbf16>, vector<128x128xbf16>, vector<16x128xf32> -> vector<16x128xf32>
    %c0_29 = arith.constant 0 : index
    %c0_30 = arith.constant 0 : index
    %71 = vector.load %arg9[%c0_29, %c0_30] : memref<1x128xf32, #tpu.memory_space<vmem>>, vector<1x128xf32>
    %72 = vector.broadcast %71 : vector<1x128xf32> to vector<16x128xf32>
    %73 = arith.addf %70, %72 : vector<16x128xf32>
    %cst_31 = arith.constant 0.000000e+00 : f32
    %74 = vector.broadcast %cst_31 : f32 to vector<16x128xf32>
    %75 = arith.maximumf %73, %74 : vector<16x128xf32>
    %cst_32 = arith.constant 6.000000e+00 : f32
    %76 = vector.broadcast %cst_32 : f32 to vector<16x128xf32>
    %77 = arith.minimumf %75, %76 : vector<16x128xf32>
    %c0_33 = arith.constant 0 : index
    %c0_34 = arith.constant 0 : index
    %78 = vector.load %arg10[%c0_33, %c0_34] : memref<3x128xf32, #tpu.memory_space<vmem>>, vector<3x128xf32>
    %79 = vector.extract_strided_slice %78 {offsets = [1, 0], sizes = [1, 128], strides = [1, 1]} : vector<3x128xf32> to vector<1x128xf32>
    %80 = vector.broadcast %79 : vector<1x128xf32> to vector<16x128xf32>
    %81 = arith.mulf %77, %80 : vector<16x128xf32>
    %c1_i32_35 = arith.constant 1 : i32
    %82 = tpu.dynamic_rotate %77 by %c1_i32_35 dim 0 : vector<16x128xf32>, i32 -> vector<16x128xf32>
    %cst_36 = arith.constant 0.000000e+00 : f32
    %83 = vector.shape_cast %29 : vector<16x1xi1> to vector<16x1xi1>
    %84 = vector.broadcast %83 : vector<16x1xi1> to vector<16x128xi1>
    %85 = vector.broadcast %cst_36 : f32 to vector<16x128xf32>
    %86 = arith.select %84, %85, %82 : vector<16x128xi1>, vector<16x128xf32>
    %87 = vector.extract_strided_slice %78 {offsets = [0, 0], sizes = [1, 128], strides = [1, 1]} : vector<3x128xf32> to vector<1x128xf32>
    %88 = vector.broadcast %87 : vector<1x128xf32> to vector<16x128xf32>
    %89 = arith.mulf %86, %88 : vector<16x128xf32>
    %90 = arith.addf %81, %89 : vector<16x128xf32>
    %c15_i32_37 = arith.constant 15 : i32
    %91 = tpu.dynamic_rotate %77 by %c15_i32_37 dim 0 : vector<16x128xf32>, i32 -> vector<16x128xf32>
    %cst_38 = arith.constant 0.000000e+00 : f32
    %92 = vector.shape_cast %31 : vector<16x1xi1> to vector<16x1xi1>
    %93 = vector.broadcast %92 : vector<16x1xi1> to vector<16x128xi1>
    %94 = vector.broadcast %cst_38 : f32 to vector<16x128xf32>
    %95 = arith.select %93, %94, %91 : vector<16x128xi1>, vector<16x128xf32>
    %96 = vector.extract_strided_slice %78 {offsets = [2, 0], sizes = [1, 128], strides = [1, 1]} : vector<3x128xf32> to vector<1x128xf32>
    %97 = vector.broadcast %96 : vector<1x128xf32> to vector<16x128xf32>
    %98 = arith.mulf %95, %97 : vector<16x128xf32>
    %99 = arith.addf %90, %98 : vector<16x128xf32>
    %c0_39 = arith.constant 0 : index
    %c0_40 = arith.constant 0 : index
    %100 = vector.load %arg15[%c0_39, %c0_40] : memref<16x128xf32, #tpu.memory_space<vmem>>, vector<16x128xf32>
    tpu.vector_store %arg15[%c0_39, %c0_40], %99 {strides = array<i32>} : memref<16x128xf32, #tpu.memory_space<vmem>>, vector<16x128xf32>,
    %c0_41 = arith.constant 0 : index
    %c0_42 = arith.constant 0 : index
    %101 = tpu.strided_load %arg15[%c0_41, %c0_42] {strides = array<i32: 2, 1>} : memref<16x128xf32, #tpu.memory_space<vmem>>, vector<8x128xf32>
    %c0_43 = arith.constant 0 : index
    %c0_44 = arith.constant 0 : index
    %102 = vector.load %arg11[%c0_43, %c0_44] : memref<1x128xf32, #tpu.memory_space<vmem>>, vector<1x128xf32>
    %103 = vector.broadcast %102 : vector<1x128xf32> to vector<8x128xf32>
    %104 = arith.addf %101, %103 : vector<8x128xf32>
    %cst_45 = arith.constant 0.000000e+00 : f32
    %105 = vector.broadcast %cst_45 : f32 to vector<8x128xf32>
    %106 = arith.maximumf %104, %105 : vector<8x128xf32>
    %cst_46 = arith.constant 6.000000e+00 : f32
    %107 = vector.broadcast %cst_46 : f32 to vector<8x128xf32>
    %108 = arith.minimumf %106, %107 : vector<8x128xf32>
    %109 = arith.truncf %108 : vector<8x128xf32> to vector<8x128xbf16>
    %c0_47 = arith.constant 0 : index
    %c0_48 = arith.constant 0 : index
    %110 = vector.load %arg12[%c0_47, %c0_48] : memref<128x128xbf16, #tpu.memory_space<vmem>>, vector<128x128xbf16>
    %cst_49 = arith.constant dense<0.000000e+00> : vector<8x128xf32>
    %111 = tpu.matmul %109, %110, %cst_49 {dimension_numbers = #tpu.dot_dimension_numbers<[1], [0], [0], [1], [0, 0, 1, 1], [], []>} : vector<8x128xbf16>, vector<128x128xbf16>, vector<8x128xf32> -> vector<8x128xf32>
    %c0_50 = arith.constant 0 : index
    %c0_51 = arith.constant 0 : index
    %112 = vector.load %arg13[%c0_50, %c0_51] : memref<1x128xf32, #tpu.memory_space<vmem>>, vector<1x128xf32>
    %113 = vector.broadcast %112 : vector<1x128xf32> to vector<8x128xf32>
    %114 = arith.addf %111, %113 : vector<8x128xf32>
    %c0_52 = arith.constant 0 : index
    %c0_53 = arith.constant 0 : index
    %115 = vector.load %arg14[%c0_52, %c0_53] : memref<8x128xf32, #tpu.memory_space<vmem>>, vector<8x128xf32>
    tpu.vector_store %arg14[%c0_52, %c0_53], %114 {strides = array<i32>} : memref<8x128xf32, #tpu.memory_space<vmem>>, vector<8x128xf32>,
    return
  }
  func.func @transform_0(%arg0: i32) -> (i32, i32) {
    %c0_i32 = arith.constant 0 : i32
    %c0_i32_0 = arith.constant 0 : i32
    return %arg0, %c0_i32 : i32, i32
  }
  func.func @transform_1(%arg0: i32) -> (i32, i32) {
    %c0_i32 = arith.constant 0 : i32
    %c0_i32_0 = arith.constant 0 : i32
    %c0_i32_1 = arith.constant 0 : i32
    return %c0_i32, %c0_i32_0 : i32, i32
  }
  func.func @transform_2(%arg0: i32) -> (i32, i32) {
    %c0_i32 = arith.constant 0 : i32
    %c0_i32_0 = arith.constant 0 : i32
    %c0_i32_1 = arith.constant 0 : i32
    return %c0_i32, %c0_i32_0 : i32, i32
  }
  func.func @transform_3(%arg0: i32) -> (i32, i32) {
    %c0_i32 = arith.constant 0 : i32
    %c0_i32_0 = arith.constant 0 : i32
    %c0_i32_1 = arith.constant 0 : i32
    return %c0_i32, %c0_i32_0 : i32, i32
  }
  func.func @transform_4(%arg0: i32) -> (i32, i32) {
    %c0_i32 = arith.constant 0 : i32
    %c0_i32_0 = arith.constant 0 : i32
    %c0_i32_1 = arith.constant 0 : i32
    return %c0_i32, %c0_i32_0 : i32, i32
  }
  func.func @transform_5(%arg0: i32) -> (i32, i32) {
    %c0_i32 = arith.constant 0 : i32
    %c0_i32_0 = arith.constant 0 : i32
    %c0_i32_1 = arith.constant 0 : i32
    return %c0_i32, %c0_i32_0 : i32, i32
  }
  func.func @transform_6(%arg0: i32) -> (i32, i32) {
    %c0_i32 = arith.constant 0 : i32
    %c0_i32_0 = arith.constant 0 : i32
    %c0_i32_1 = arith.constant 0 : i32
    return %c0_i32, %c0_i32_0 : i32, i32
  }
  func.func @transform_7(%arg0: i32) -> (i32, i32) {
    %c0_i32 = arith.constant 0 : i32
    %c0_i32_0 = arith.constant 0 : i32
    %c0_i32_1 = arith.constant 0 : i32
    return %c0_i32, %c0_i32_0 : i32, i32
  }
  func.func @transform_8(%arg0: i32) -> (i32, i32) {
    %c0_i32 = arith.constant 0 : i32
    %c0_i32_0 = arith.constant 0 : i32
    %c0_i32_1 = arith.constant 0 : i32
    return %c0_i32, %c0_i32_0 : i32, i32
  }
  func.func @transform_9(%arg0: i32) -> (i32, i32) {
    %c0_i32 = arith.constant 0 : i32
    %c0_i32_0 = arith.constant 0 : i32
    %c0_i32_1 = arith.constant 0 : i32
    return %c0_i32, %c0_i32_0 : i32, i32
  }
  func.func @transform_10(%arg0: i32) -> (i32, i32) {
    %c0_i32 = arith.constant 0 : i32
    %c0_i32_0 = arith.constant 0 : i32
    %c0_i32_1 = arith.constant 0 : i32
    return %c0_i32, %c0_i32_0 : i32, i32
  }
  func.func @transform_11(%arg0: i32) -> (i32, i32) {
    %c0_i32 = arith.constant 0 : i32
    %c0_i32_0 = arith.constant 0 : i32
    %c0_i32_1 = arith.constant 0 : i32
    return %c0_i32, %c0_i32_0 : i32, i32
  }
  func.func @transform_12(%arg0: i32) -> (i32, i32) {
    %c0_i32 = arith.constant 0 : i32
    %c0_i32_0 = arith.constant 0 : i32
    %c0_i32_1 = arith.constant 0 : i32
    return %c0_i32, %c0_i32_0 : i32, i32
  }
  func.func @transform_13(%arg0: i32) -> (i32, i32) {
    %c0_i32 = arith.constant 0 : i32
    %c0_i32_0 = arith.constant 0 : i32
    return %arg0, %c0_i32 : i32, i32
  }
}

</mosaic_0001>

<bundles_post_ra>
// kernel: tpu_custom_call.1
= control target key start
LH: loop header
LB: loop body
LE: loop exit
PB: predicated region body
PF: predicated region fallthrough
CT: control target
= control target key end

     0   :  { %s2260_s0 = inlined_call_operand.hbm [shape: f32[32,128], index: 0, kind: input, shape index: {}]   ;;  %s2261_s1 = inlined_call_operand.hbm [shape: bf16[128,128], index: 1, kind: input, shape index: {}]   ;;  %s2262_s2 = inlined_call_operand.vmem [shape: f32[1,128], index: 2, kind: input, shape index: {}]   ;;  %s2263_s3 = inlined_call_operand.vmem [shape: f32[3,128], index: 3, kind: input, shape index: {}]   ;;  %s2264_s4 = inlined_call_operand.vmem [shape: f32[1,128], index: 4, kind: input, shape index: {}]   ;;  %s2265_s5 = inlined_call_operand.hbm [shape: bf16[128,128], index: 5, kind: input, shape index: {}]   ;;  %s2266_s6 = inlined_call_operand.vmem [shape: f32[1,128], index: 6, kind: input, shape index: {}]   ;;  %s2267_s7 = inlined_call_operand.hbm [shape: bf16[128,128], index: 7, kind: input, shape index: {}]   ;;  %s2268_s8 = inlined_call_operand.vmem [shape: f32[1,128], index: 8, kind: input, shape index: {}]   ;;  %s2269_s9 = inlined_call_operand.vmem [shape: f32[3,128], index: 9, kind: input, shape index: {}]   ;;  %s2270_s10 = inlined_call_operand.vmem [shape: f32[1,128], index: 10, kind: input, shape index: {}]   ;;  %s2271_s11 = inlined_call_operand.hbm [shape: bf16[128,128], index: 11, kind: input, shape index: {}]   ;;  %s2272_s12 = inlined_call_operand.vmem [shape: f32[1,128], index: 12, kind: input, shape index: {}]   ;;  %s2273_s13 = inlined_call_operand.hbm [shape: f32[16,128], index: 13, kind: output, shape index: {}]  }
   0x1   :  { %2280 = sst [smem:[#allocation19_spill]] %s2268_s8 }
   0x2   :  { %2281 = sst [smem:[#allocation20_spill]] %s2269_s9 }
   0x3   :  { %2282 = sst [smem:[#allocation21_spill]] %s2270_s10 }
   0x4   :  { %2283 = sst [smem:[#allocation22_spill]] %s2272_s12 }
   0x5   :  { %2284 = sst [smem:[#allocation23_spill]] %s2273_s13 }
   0x6   :  { %18 = vsyncpa [#allocation4], 0 }
   0x7   :  { %20 = vsyncpa [#allocation4 + $0x1], 0 }
   0x8   :  { %21 = vsyncpa [#allocation7], 0 }
   0x9   :  { %22 = vsyncpa [#allocation10], 0 }
   0xa   :  { %23 = vsyncpa [#allocation5], 0 }
   0xb   :  { %25 = vsyncpa [#allocation5 + $0x1], 0  ;;  %s1843_s25 = smov 0   ;;  %s1845_s26 = smov 0  }
   0xc   :  { %s1847_s27 = smov 0   ;;  %s1849_s28 = smov 0  }
   0xd LB: > { %2285 = sst [smem:[#allocation17_spill]] %s1747_s25  ;;  %s1864_s29 = sadd.s32 4294967295, %s1759_s28   ;;  %s1759_s28 = sphi %s1849_s28, %s2317_s28   ;;  %s1755_s27 = sphi %s1847_s27, %s2316_s27   ;;  %s1751_s26 = sphi %s1845_s26, %s2315_s26   ;;  %s1747_s25 = sphi %s1843_s25, %s2314_s25  }
   0xe   : > { %s1242_s30 = sadd.s32 4294967294, %s1759_s28   ;;  %p51_p0 = scmp.ne.s32.totalorder %s1751_s26, %s1747_s25 }
   0xf   : > { %p2277_p1 = scmp.eq.s32.totalorder %s1864_s29, 0  ;;  %p333_p3 = scmp.eq.s32.totalorder %s1242_s30, 1 }
  0x10   : > { %p1243_p5 = scmp.ge.s32.totalorder %s1759_s28, 1  ;;  %p340_p7 = scmp.lt.s32.totalorder %s1759_s28, 3 }
  0x11   : > { %p1873_p4 = por %p2277_p1, %p51_p0  ;;  %p1878_p6 = por %p333_p3, %p51_p0 }
  0x12   : > { %p1883_p8 = pnand %p1243_p5, %p340_p7  ;;  %s1761_s17 = smov [#allocation6]  }
  0x13   : > { %s2286_s14 = scalar_select %p1873_p4, 1, 0 }
  0x14   : > { %s2287_s15 = scalar_select %p1878_p6, 1, 0 }
  0x15   : > { %s2289_s16 = scalar_select %p1883_p8, 1, 0 }
  0x16   : > { %2288 = sst [smem:[#allocation18_spill]] %s2287_s15  ;;  %s352_s18 = sshll.u32 %s1761_s17, 4  ;;  %s1887_s18 = int_to_ptr.vmem [resolvable:$true] %s352_s18 }
  0x17   : > { %p1438_p9 = pneg %p1883_p8  ;;  %s1762_s20 = smov [#allocation9]  }
  0x18   : > { %s390_s21 = sshll.u32 %s1762_s20, 4  ;;  %s1763_s22 = smov [#allocation8]   ;;  %s1898_s21 = int_to_ptr.vmem [resolvable:$true] %s390_s21 }
  0x19   : > { %p1894_p11 = pnand %p1438_p9, %p2277_p1  ;;  %s1900_s23 = sshll.u32 %s1763_s22, 4  ;;  %s375_s23 = int_to_ptr.vmem [resolvable:$true] %s1900_s23 }
  0x1a   : > { %s1543_s17 = scalar_lea.hbm %s2261_s1, 1024 }
  0x1b   : > { %p1544_p12 = scmp.ne.s32.totalorder %s2261_s1, %s1543_s17  ;;  %p1910_p13 = pneg %p1894_p11 }
  0x1c   : > { %p1550_p5 = scmp.lt.u32.totalorder %s1543_s17, %s2261_s1 }
  0x1d   : > { %p1546_p0 = pnand %p1910_p13, %p1544_p12 }
  0x1f   : > { %p1547_p3 = pneg %p1546_p0 }
  0x21   : > { %p1552_p7 = pnand %p1550_p5, %p1547_p3 }
  0x23   : > { %1555 = shalt.err (!%p1552_p7)
}
  0x24   : > { %s1556_s25 = scalar_lea.vmem %s1887_s18, 1024  ;;  %p1564_p2 = scmp.lt.s32.totalorder %s1887_s18, %s1887_s18 }
  0x25   : > { %p1557_p9 = scmp.ne.s32.totalorder %s1887_s18, %s1556_s25  ;;  %p1565_p6 = scmp.lt.s32.totalorder %s1556_s25, %s1556_s25 }
  0x27   : > { %p1559_p10 = pnand %p1557_p9, %p1910_p13  ;;  %p1566_p12 = por %p1565_p6, %p1564_p2 }
  0x29   : > { %p1560_p1 = pneg %p1559_p10 }
  0x2b   : > { %p1567_p0 = pnand %p1566_p12, %p1560_p1 }
  0x2d   : > { %1570 = shalt.err (!%p1567_p0)
}
  0x2e   : > { %s1764_s15 = smov 64   ;;  %s1765_s24 = smov 4  }
  0x2f   : > { %1441 = dma.hbm_to_vmem [thread:$0]  (!%p1894_p11), %s2261_s1, 1024, %s1887_s18, [#allocation7], %s1764_s15, %s1764_s15, %s1765_s24  }
  0x30   : > { %s1571_s25 = scalar_lea.hbm %s2267_s7, 1024 }
  0x31   : > { %p1572_p1 = scmp.ne.s32.totalorder %s2267_s7, %s1571_s25  ;;  %p1578_p10 = scmp.lt.u32.totalorder %s1571_s25, %s2267_s7 }
  0x33   : > { %p1574_p2 = pnand %p1572_p1, %p1910_p13 }
  0x35   : > { %p1575_p6 = pneg %p1574_p2 }
  0x37   : > { %p1580_p3 = pnand %p1578_p10, %p1575_p6 }
  0x39   : > { %1583 = shalt.err (!%p1580_p3)
}
  0x3a   : > { %s1584_s18 = scalar_lea.vmem %s1898_s21, 1024  ;;  %p1592_p12 = scmp.lt.s32.totalorder %s1898_s21, %s1898_s21 }
  0x3b   : > { %p1585_p5 = scmp.ne.s32.totalorder %s1898_s21, %s1584_s18  ;;  %p1593_p0 = scmp.lt.s32.totalorder %s1584_s18, %s1584_s18 }
  0x3d   : > { %p1587_p7 = pnand %p1585_p5, %p1910_p13  ;;  %p1594_p1 = por %p1593_p0, %p1592_p12 }
  0x3f   : > { %p1588_p9 = pneg %p1587_p7 }
  0x41   : > { %p1595_p2 = pnand %p1594_p1, %p1588_p9 }
  0x43   : > { %1598 = shalt.err (!%p1595_p2)
}
  0x44   : > { %1447 = dma.hbm_to_vmem [thread:$0]  (!%p1894_p11), %s2267_s7, 1024, %s1898_s21, [#allocation10], %s1764_s15, %s1764_s15, %s1765_s24  }
  0x45   : > { %s1599_s30 = scalar_lea.hbm %s2265_s5, 1024 }
  0x46   : > { %p1600_p6 = scmp.ne.s32.totalorder %s2265_s5, %s1599_s30  ;;  %p1606_p5 = scmp.lt.u32.totalorder %s1599_s30, %s2265_s5 }
  0x48   : > { %p1602_p10 = pnand %p1600_p6, %p1910_p13 }
  0x4a   : > { %p1603_p3 = pneg %p1602_p10 }
  0x4c   : > { %p1608_p7 = pnand %p1606_p5, %p1603_p3 }
  0x4e   : > { %1611 = shalt.err (!%p1608_p7)
}
  0x4f   : > { %s1612_s18 = scalar_lea.vmem %s375_s23, 1024  ;;  %p1620_p1 = scmp.lt.s32.totalorder %s375_s23, %s375_s23 }
  0x50   : > { %p1613_p9 = scmp.ne.s32.totalorder %s375_s23, %s1612_s18  ;;  %p1621_p2 = scmp.lt.s32.totalorder %s1612_s18, %s1612_s18 }
  0x52   : > { %p1615_p12 = pnand %p1613_p9, %p1910_p13  ;;  %p1622_p4 = por %p1621_p2, %p1620_p1 }
  0x54   : > { %p1616_p0 = pneg %p1615_p12 }
  0x56   : > { %p1623_p8 = pnand %p1622_p4, %p1616_p0 }
  0x58   : > { %1626 = shalt.err (!%p1623_p8)
}
  0x59   : > { %1444 = dma.hbm_to_vmem [thread:$0]  (!%p1894_p11), %s2265_s5, 1024, %s375_s23, [#allocation7], %s1764_s15, %s1764_s15, %s1765_s24  }
  0x5a   : > { %s1766_s9 = smov [#allocation11]   ;;  %s1627_s17 = scalar_lea.hbm %s2271_s11, 1024 }
  0x5b   : > { %s412_s10 = sshll.u32 %s1766_s9, 4  ;;  %p1628_p4 = scmp.ne.s32.totalorder %s2271_s11, %s1627_s17  ;;  %s413_s10 = int_to_ptr.vmem [resolvable:$true] %s412_s10 }
  0x5c   : > { %p1634_p10 = scmp.lt.u32.totalorder %s1627_s17, %s2271_s11 }
  0x5d   : > { %p1630_p8 = pnand %p1628_p4, %p1910_p13 }
  0x5f   : > { %p1631_p6 = pneg %p1630_p8 }
  0x61   : > { %p1636_p3 = pnand %p1634_p10, %p1631_p6 }
  0x63   : > { %1639 = shalt.err (!%p1636_p3)
}
  0x64   : > { %s1640_s23 = scalar_lea.vmem %s413_s10, 1024  ;;  %p1648_p12 = scmp.lt.s32.totalorder %s413_s10, %s413_s10 }
  0x65   : > { %p1641_p5 = scmp.ne.s32.totalorder %s413_s10, %s1640_s23  ;;  %p1649_p0 = scmp.lt.s32.totalorder %s1640_s23, %s1640_s23 }
  0x67   : > { %p1643_p7 = pnand %p1641_p5, %p1910_p13  ;;  %p1650_p1 = por %p1649_p0, %p1648_p12 }
  0x69   : > { %p1644_p9 = pneg %p1643_p7 }
  0x6b   : > { %p1651_p2 = pnand %p1650_p1, %p1644_p9 }
  0x6d   : > { %1654 = shalt.err (!%p1651_p2)
}
  0x6e   : > { %1450 = dma.hbm_to_vmem [thread:$0]  (!%p1894_p11), %s2271_s11, 1024, %s413_s10, [#allocation10], %s1764_s15, %s1764_s15, %s1765_s24  }
  0x6f   : > { %s2004_s13 = sadd.s32 1, %s1759_s28   ;;  %s38_s19 = sadd.s32 1, %s1755_s27 }
  0x70   : > { %s35_s9 = ssub.s32 %s1759_s28, %s2004_s13  ;;  %p45_p13 = scmp.ne.s32.totalorder %s1755_s27, %s1751_s26 }
  0x71   : > { %p36_p4 = scmp.eq.s32.totalorder %s35_s9, 0  ;;  %p46_p8 = scmp.eq.s32.totalorder %s1759_s28, 0 }
  0x72   : > { %p2292_p6 = scmp.eq.s32.totalorder %s1864_s29, 1  ;;  %p1463_p3 = scmp.lt.s32.totalorder %s1759_s28, 2 }
  0x73   : > { %s2020_s30 = scalar_select %p36_p4, %s1755_s27, %s38_s19  }
  0x74   : > { %p2014_p10 = por %p2292_p6, %p45_p13  ;;  %p47_p5 = por %p46_p8, %p45_p13 }
  0x75   : > { %s429_s17 = sand.u32 1, %s1755_s27   ;;  %s1301_s15 = sshll.u32 %s1759_s28, 8 }
  0x76   : > { %s1249_s20 = sshll.u32 %s429_s17, 4  ;;  %s2027_s22 = scalar_lea.hbm %s2260_s0, %s1301_s15 }
  0x77   : > { %s433_s25 = scalar_lea.vmem [#allocation3], %s1249_s20  ;;  %p2031_p11 = pnand %p1463_p3, %p47_p5 }
  0x78   : > { %s440_s18 = sshll.u32 %s433_s25, 4  ;;  %s2035_s21 = scalar_lea.sflag [#allocation4], %s429_s17  ;;  %s2029_s18 = int_to_ptr.vmem [resolvable:$true] %s440_s18 }
  0x79   : > { %s1655_s8 = scalar_lea.hbm %s2027_s22, 256  ;;  %p1657_p9 = pneg %p2031_p11 }
  0x7a   : > { %p1656_p7 = scmp.ne.s32.totalorder %s2027_s22, %s1655_s8  ;;  %s1660_s20 = scalar_lea.hbm %s2260_s0, 512 }
  0x7b   : > { %p1661_p1 = scmp.lt.u32.totalorder %s2027_s22, %s2260_s0  ;;  %p1662_p2 = scmp.lt.u32.totalorder %s1660_s20, %s1655_s8 }
  0x7c   : > { %p1658_p12 = pnand %p1657_p9, %p1656_p7  ;;  %p1664_p4 = scmp.lt.u32.totalorder %s1655_s8, %s2027_s22 }
  0x7d   : > { %p1663_p13 = por %p1662_p2, %p1661_p1 }
  0x7e   : > { %p1659_p0 = pneg %p1658_p12 }
  0x7f   : > { %p1665_p8 = por %p1664_p4, %p1663_p13 }
  0x81   : > { %p1666_p6 = pnand %p1665_p8, %p1659_p0 }
  0x83   : > { %1669 = shalt.err (!%p1666_p6)
}
  0x84   : > { %s1670_s17 = scalar_lea.vmem %s2029_s18, 256  ;;  %s1767_s10 = smov [#allocation3]  }
  0x85   : > { %p1671_p3 = scmp.ne.s32.totalorder %s2029_s18, %s1670_s17  ;;  %s1675_s25 = sshll.u32 %s1767_s10, 4  ;;  %s1676_s25 = int_to_ptr.vmem [resolvable:$false] %s1675_s25 }
  0x86   : > { %s1677_s19 = scalar_lea.vmem %s1676_s25, 512  ;;  %p1678_p12 = scmp.lt.s32.totalorder %s2029_s18, %s1676_s25 }
  0x87   : > { %p1673_p5 = pnand %p1671_p3, %p1657_p9  ;;  %p1679_p1 = scmp.lt.s32.totalorder %s1677_s19, %s1670_s17 }
  0x89   : > { %p1674_p7 = pneg %p1673_p5  ;;  %p1680_p2 = por %p1679_p1, %p1678_p12 }
  0x8b   : > { %p1681_p13 = pnand %p1680_p2, %p1674_p7 }
  0x8d   : > { %1684 = shalt.err (!%p1681_p13)
}
  0x8e   : > { %s1768_s8 = smov 128   ;;  %s1769_s9 = smov 8  }
  0x8f   : > { %1454 = dma.hbm_to_vmem [thread:$0]  (!%p2031_p11), %s2027_s22, 256, %s2029_s18, %s2035_s21, %s1768_s8, %s1768_s8, %s1769_s9  }
  0x90   : > { %p2295_p9 = scmp.ne.s32.totalorder %s2289_s16, 0 }
  0x91   : > { %s2066_s20 = sand.u32 (!%p2295_p9), 1, %s1751_s26   ;;  %p2296_p0 = scmp.ne.s32.totalorder (!%p2295_p9), %s2286_s14, 0 }
  0x92   : > { %452 = sbr.rel (%p2295_p9) target bundleno = 1127 (0x467), region = 72  ;;  %s1253_s15 = sshll.u32 (!%p2295_p9), %s2066_s20, 4 }
  0x93   : > { %s455_s24 = scalar_lea.sflag (!%p2295_p9), [#allocation4], %s2066_s20  ;;  %s2070_s17 = scalar_lea.vmem (!%p2295_p9), [#allocation3], %s1253_s15 }
  0x99   : > { %1730 = dma.done.wait (%p2296_p0), %s455_s24, 256  }
  0x9a   : > { %1732 = vsyncadd (%p2296_p0), %s455_s24, 4294967040  ;;  %p2297_p11 = scmp.eq.s32.totalorder %s1864_s29, 0 }
  0x9c   : > { %1734 = dma.done.wait (%p2297_p11), [#allocation7], 2048   ;;  %p2298_p4 = pmov %p2297_p11 }
  0x9e   : > { %1736 = vsyncadd (%p2298_p4), [#allocation7], 4294965248  ;;  %p2299_p8 = pmov %p2298_p4 }
  0x9f   : > { %p2300_p6 = pmov %p2298_p4 }
  0xa0   : > { %1738 = dma.done.wait (%p2299_p8), [#allocation10], 2048  }
  0xa1   : > { %1740 = vsyncadd (%p2300_p6), [#allocation10], 4294965248  ;;  %v1770_v0 = vmov 0.0   ;;  %vm1771_vm0 = vmmov 0   ;;  %v1511_v1 = vld [vmem:[#allocation6] sm:$0xff]   ;;  %v1512_v2 = vld [vmem:[#allocation6 + $0x8] sm:$0xff]   ;;  %v638_v26 = vlaneseq }
  0xa2   : > { %1338 = vmatprep.subr.bf16.mxu0 %v1770_v0  ;;  %1354 = vmatprep.mubr.msk.bf16.mxu0 %vm1771_vm0, %v1770_v0  ;;  %v1513_v3 = vld [vmem:[#allocation6 + $0x10] sm:$0xff]   ;;  %v1514_v4 = vld [vmem:[#allocation6 + $0x18] sm:$0xff]   ;;  %v1519_v5 = vld [vmem:[#allocation8] sm:$0xff]   ;;  %s2305_s9 = sld [smem:[#allocation19_spill]]  ;;  %s2307_s22 = sld [smem:[#allocation21_spill]] }
  0xa3   : > { %1358 = vmatprep.subr.bf16.mxu1 %v1770_v0  ;;  %1374 = vmatprep.mubr.msk.bf16.mxu1 %vm1771_vm0, %v1770_v0  ;;  %v1515_v6 = vld [vmem:[#allocation6 + $0x20] sm:$0xff]   ;;  %v1516_v7 = vld [vmem:[#allocation6 + $0x28] sm:$0xff]   ;;  %v1517_v8 = vld [vmem:[#allocation6 + $0x30] sm:$0xff]   ;;  %v2125_v28 = vshrl.u32 %v638_v26, 7  ;;  %s1258_s18 = sshll.u32 %s2066_s20, 3  ;;  %s2308_s10 = sld [smem:[#allocation22_spill]] }
  0xa4   : > { %1339 = vmatpush3.bf16.msra.mxu0 %v1511_v1  ;;  %1359 = vmatpush3.bf16.msra.mxu1 %v1519_v5  ;;  %v1518_v9 = vld [vmem:[#allocation6 + $0x38] sm:$0xff]   ;;  %v2098_v10 = vld [vmem:[%s2070_s17] sm:$0xff]  ;;  %v1520_v13 = vld [vmem:[#allocation8 + $0x8] sm:$0xff]   ;;  %s1298_s25 = sshll.u32 %s1864_s29, 7  ;;  %s516_s19 = scalar_lea.vmem [#allocation12], %s1258_s18 }
  0xa5   : > { %1340 = vmatprep.subr.bf16.mxu0 %v1770_v0  ;;  %1360 = vmatprep.subr.bf16.mxu1 %v1770_v0  ;;  %v2101_v11 = vld [vmem:[%s2070_s17 + $0x8] sm:$0xff]  ;;  %v1521_v14 = vld [vmem:[#allocation8 + $0x10] sm:$0xff]   ;;  %v1523_v16 = vld [vmem:[#allocation8 + $0x20] sm:$0xff]   ;;  %v640_v30 = vadd.s32 8, %v2125_v28  ;;  %v672_v33 = vsub.s32 1, %v2125_v28  ;;  %v708_v36 = vsub.s32 2, %v2125_v28 }
  0xa6   : > { %v521_v12 = vpack.c.bf16 %v2101_v11, %v2098_v10  ;;  %v1522_v15 = vld [vmem:[#allocation8 + $0x18] sm:$0xff]   ;;  %v1524_v17 = vld [vmem:[#allocation8 + $0x28] sm:$0xff]   ;;  %v1525_v18 = vld [vmem:[#allocation8 + $0x30] sm:$0xff]   ;;  %v645_v38 = vand.u32 15, %v2125_v28  ;;  %v689_v42 = vsub.s32 0, %v2125_v28  ;;  %vm678_vm3 = vcmp.lt.s32.totalorder %v2125_v28, 1 }
  0xa7   : > { %v1526_v19 = vld [vmem:[#allocation8 + $0x38] sm:$0xff]   ;;  %v1527_v20 = vld [vmem:[#allocation9] sm:$0xff]   ;;  %v1528_v21 = vld [vmem:[#allocation9 + $0x8] sm:$0xff]   ;;  %v652_v41 = vand.u32 15, %v640_v30  ;;  %vm697_vm4 = vcmp.lt.s32.totalorder %v2125_v28, 7  ;;  %s2306_s17 = sld [smem:[#allocation20_spill]] }
  0xa8   : > { %1341 = vmatpush3.bf16.msra.mxu0 %v1512_v2  ;;  %1361 = vmatpush3.bf16.msra.mxu1 %v1520_v13  ;;  %v1529_v22 = vld [vmem:[#allocation9 + $0x10] sm:$0xff]   ;;  %v1530_v23 = vld [vmem:[#allocation9 + $0x18] sm:$0xff]   ;;  %v1531_v24 = vld [vmem:[#allocation9 + $0x20] sm:$0xff]   ;;  %vm2139_vm1 = vcmp.eq.s32.totalorder %v645_v38, 0  ;;  %s1134_s8 = sshll.u32 %s516_s19, 4  ;;  %s2309_s24 = sld [smem:[#allocation23_spill]]  ;;  %s2218_s8 = int_to_ptr.vmem [resolvable:$true] %s1134_s8 }
  0xa9   : > { %1342 = vmatprep.subr.bf16.mxu0 %v1770_v0  ;;  %1362 = vmatprep.subr.bf16.mxu1 %v1770_v0  ;;  %v1532_v25 = vld [vmem:[#allocation9 + $0x28] sm:$0xff]   ;;  %v1259_v27 = vld [vmem:[%s2262_s2] ss:$0 sm:$0xff]  ;;  %vm2143_vm2 = vcmp.eq.s32.totalorder %v652_v41, 15  ;;  %v1542_v38 = vld [vmem:[#allocation11 + $0x38] sm:$0xff]   ;;  %s1121_s14 = scalar_lea.sflag [#allocation5], %s2066_s20 }
  0xaa   : > { %v669_v40 = vld [vmem:[%s2263_s3] sm:$0x7]  ;;  %s1685_s29 = scalar_lea.vmem %s2218_s8, 128  ;;  %s1772_s16 = smov [#allocation12]  }
  0xab   : > { %v673_v45 = vrot.slane %v669_v40, %v672_v33  ;;  %v709_v46 = vrot.slane %v669_v40, %v708_v36  ;;  %v690_v50 = vrot.slane %v669_v40, %v689_v42  ;;  %v1287_v28 = vld [vmem:[%s2307_s22] ss:$0 sm:$0xff]  ;;  %p1686_p3 = scmp.ne.s32.totalorder %s2218_s8, %s1685_s29  ;;  %s1689_s22 = sshll.u32 %s1772_s16, 4  ;;  %s1690_s22 = int_to_ptr.vmem [resolvable:$false] %s1689_s22 }
  0xac   : > { %1343 = vmatpush3.bf16.msra.mxu0 %v1513_v3  ;;  %1363 = vmatpush3.bf16.msra.mxu1 %v1521_v14  ;;  %s1691_s18 = scalar_lea.vmem %s1690_s22, 256  ;;  %p1692_p12 = scmp.lt.s32.totalorder %s2218_s8, %s1690_s22 }
  0xad   : > { %1344 = vmatprep.subr.bf16.mxu0 %v1770_v0  ;;  %1364 = vmatprep.subr.bf16.mxu1 %v1770_v0  ;;  %p1687_p5 = pnand %p1686_p3, %p2014_p10  ;;  %p1693_p1 = scmp.lt.s32.totalorder %s1691_s18, %s1685_s29 }
  0xaf   : > { %p1688_p7 = pneg %p1687_p5  ;;  %p1694_p2 = por %p1693_p1, %p1692_p12 }
  0xb0   : > { %1345 = vmatpush3.bf16.msra.mxu0 %v1514_v4  ;;  %1365 = vmatpush3.bf16.msra.mxu1 %v1522_v15 }
  0xb1   : > { %1346 = vmatprep.subr.bf16.mxu0 %v1770_v0  ;;  %1366 = vmatprep.subr.bf16.mxu1 %v1770_v0  ;;  %p1695_p13 = pnand %p1694_p2, %p1688_p7 }
  0xb4   : > { %1347 = vmatpush3.bf16.msra.mxu0 %v1515_v6  ;;  %1367 = vmatpush3.bf16.msra.mxu1 %v1523_v16  ;;  %v1268_v6 = vld [vmem:[%s2264_s4] ss:$0 sm:$0xff] }
  0xb5   : > { %1348 = vmatprep.subr.bf16.mxu0 %v1770_v0  ;;  %1368 = vmatprep.subr.bf16.mxu1 %v1770_v0 }
  0xb8   : > { %1349 = vmatpush3.bf16.msra.mxu0 %v1516_v7  ;;  %1369 = vmatpush3.bf16.msra.mxu1 %v1524_v17 }
  0xb9   : > { %1350 = vmatprep.subr.bf16.mxu0 %v1770_v0  ;;  %1370 = vmatprep.subr.bf16.mxu1 %v1770_v0 }
  0xbc   : > { %1351 = vmatpush3.bf16.msra.mxu0 %v1517_v8  ;;  %1371 = vmatpush3.bf16.msra.mxu1 %v1525_v18  ;;  %v1533_v18 = vld [vmem:[#allocation9 + $0x30] sm:$0xff]  }
  0xbd   : > { %1352 = vmatprep.subr.bf16.mxu0 %v1770_v0  ;;  %1372 = vmatprep.subr.bf16.mxu1 %v1770_v0 }
  0xc0   : > { %1353 = vmatpush3.bf16.msra.mxu0 %v1518_v9  ;;  %1373 = vmatpush3.bf16.msra.mxu1 %v1526_v19  ;;  %v1534_v19 = vld [vmem:[#allocation9 + $0x38] sm:$0xff]  }
  0xc1   : > { %1378 = vmatprep.subr.bf16.mxu0 %v1770_v0  ;;  %1398 = vmatprep.subr.bf16.mxu1 %v1770_v0 }
  0xc3   : > { %1355 = vmatmul.mubr.bf16.vlgmr.msra.gmra.mrb[0].mxu0 %v521_v12 }
  0xc4   : > { %1394 = vmatprep.mubr.msk.bf16.mxu0 %vm1771_vm0, %v1770_v0  ;;  %1379 = vmatpush3.bf16.msra.mxu0 %v1527_v20  ;;  %v1269_v20 = vld [vmem:[%s2266_s6] ss:$0 sm:$0xff] }
  0xc5   : > { %1380 = vmatprep.subr.bf16.mxu0 %v1770_v0 }
  0xc8   : > { %1381 = vmatpush3.bf16.msra.mxu0 %v1528_v21 }
  0xc9   : > { %1382 = vmatprep.subr.bf16.mxu0 %v1770_v0 }
  0xcc   : > { %1383 = vmatpush3.bf16.msra.mxu0 %v1529_v22 }
  0xcd   : > { %1384 = vmatprep.subr.bf16.mxu0 %v1770_v0 }
  0xd0   : > { %1385 = vmatpush3.bf16.msra.mxu0 %v1530_v23 }
  0xd1   : > { %1386 = vmatprep.subr.bf16.mxu0 %v1770_v0 }
  0xd4   : > { %1387 = vmatpush3.bf16.msra.mxu0 %v1531_v24 }
  0xd5   : > { %1388 = vmatprep.subr.bf16.mxu0 %v1770_v0 }
  0xd8   : > { %1389 = vmatpush3.bf16.msra.mxu0 %v1532_v25 }
  0xd9   : > { %1390 = vmatprep.subr.bf16.mxu0 %v1770_v0 }
  0xdc   : > { %1391 = vmatpush3.bf16.msra.mxu0 %v1533_v18 }
  0xdd   : > { %1392 = vmatprep.subr.bf16.mxu0 %v1770_v0 }
  0xe0   : > { %1393 = vmatpush3.bf16.msra.mxu0 %v1534_v19 }
 0x196   : > { %v627_v29 = vpop.f32.mrb[0].mxu0 }
 0x197   : > { %v628_v31 = vadd.f32 %v1259_v27, %v627_v29  ;;  %v1356_v32 = vpop.f32.mrb[1].mxu0 }
 0x198   : > { %v630_v34 = vpop.f32.mrb[2].mxu0  ;;  %v1536_v32 = vld [vmem:[#allocation11 + $0x8] sm:$0xff]  }
 0x199   : > { %v634_v35 = vmax.f32 %v628_v31, 0.0  ;;  %v631_v37 = vadd.f32 %v1259_v27, %v630_v34  ;;  %v1357_v39 = vpop.f32.mrb[3].mxu0  ;;  %v1535_v31 = vld [vmem:[#allocation11] sm:$0xff]   ;;  %v1537_v34 = vld [vmem:[#allocation11 + $0x10] sm:$0xff]  }
 0x19a   : > { %v1278_v39 = vld [vmem:[%s2305_s9] ss:$0 sm:$0xff] }
 0x19b   : > { %v636_v43 = vmin.f32 %v634_v35, 6.0  ;;  %v635_v44 = vmax.f32 %v631_v37, 0.0  ;;  %v1538_v35 = vld [vmem:[#allocation11 + $0x18] sm:$0xff]   ;;  %v1541_v37 = vld [vmem:[#allocation11 + $0x30] sm:$0xff]  }
 0x19d   : > { %v637_v47 = vmin.f32 %v635_v44, 6.0  ;;  %v676_v51 = vrot.slane %v636_v43, 7  ;;  %v695_v52 = vrot.slane %v636_v43, 1  ;;  %v674_v63 = vmul.f32 %v673_v45, %v636_v43 }
 0x19f   : > { %v677_v53 = vrot.slane %v637_v47, 7  ;;  %v696_v54 = vrot.slane %v637_v47, 1  ;;  %v675_v59 = vmul.f32 %v673_v45, %v637_v47 }
 0x1a1   : > { %v679_v55 = vsel %vm678_vm3, %v676_v51, %v677_v53  ;;  %v680_v56 = vsel %vm678_vm3, %v677_v53, %v676_v51  ;;  %v698_v57 = vsel %vm697_vm4, %v695_v52, %v696_v54  ;;  %v699_v58 = vsel %vm697_vm4, %v696_v54, %v695_v52  ;;  %v959_v51 = vld [vmem:[%s2306_s17] sm:$0x7]  ;;  %s2216_s17 = scalar_lea.hbm %s2309_s24, %s1298_s25 }
 0x1a2   : > { %v685_v60 = vsel %vm2139_vm1, 0.0, %v680_v56  ;;  %v692_v61 = vmul.f32 %v690_v50, %v679_v55  ;;  %v705_v62 = vsel %vm2143_vm2, 0.0, %v699_v58  ;;  %v710_v5 = vmul.f32 %v709_v46, %v698_v57 }
 0x1a3   : > { %v691_v1 = vmul.f32 %v690_v50, %v685_v60  ;;  %v711_v2 = vmul.f32 %v709_v46, %v705_v62  ;;  %v989_v54 = vrot.slane %v959_v51, %v708_v36  ;;  %v975_v55 = vrot.slane %v959_v51, %v689_v42 }
 0x1a4   : > { %v694_v3 = vadd.f32 %v692_v61, %v675_v59 }
 0x1a5   : > { %v693_v4 = vadd.f32 %v691_v1, %v674_v63 }
 0x1a6   : > { %v713_v7 = vadd.f32 %v711_v2, %v694_v3 }
 0x1a7   : > { %v712_v8 = vadd.f32 %v710_v5, %v693_v4 }
 0x1a8   : > { %v722_v9 = vadd.f32 %v1268_v6, %v713_v7 }
 0x1a9   : > { %v721_v12 = vadd.f32 %v1268_v6, %v712_v8 }
 0x1aa   : > { %v724_v13 = vmax.f32 %v722_v9, 0.0 }
 0x1ab   : > { %v723_v14 = vmax.f32 %v721_v12, 0.0 }
 0x1ac   : > { %v726_v15 = vmin.f32 %v724_v13, 6.0 }
 0x1ad   : > { %v725_v16 = vmin.f32 %v723_v14, 6.0 }
 0x1af   : > { %v727_v17 = vpack.c.bf16 %v726_v15, %v725_v16  ;;  %v1288_v15 = vld [vmem:[%s2308_s10] ss:$0 sm:$0xff] }
 0x1b1   : > { %1375 = vmatmul.mubr.bf16.vlgmr.msra.gmra.mrb[0].mxu1 %v727_v17 }
 0x1b2   : > { %1414 = vmatprep.mubr.msk.bf16.mxu1 %vm1771_vm0, %v1770_v0  ;;  %1399 = vmatpush3.bf16.msra.mxu1 %v1535_v31 }
 0x1b3   : > { %1400 = vmatprep.subr.bf16.mxu1 %v1770_v0 }
 0x1b6   : > { %1401 = vmatpush3.bf16.msra.mxu1 %v1536_v32 }
 0x1b7   : > { %1402 = vmatprep.subr.bf16.mxu1 %v1770_v0 }
 0x1ba   : > { %1403 = vmatpush3.bf16.msra.mxu1 %v1537_v34 }
 0x1bb   : > { %1404 = vmatprep.subr.bf16.mxu1 %v1770_v0 }
 0x1be   : > { %1405 = vmatpush3.bf16.msra.mxu1 %v1538_v35 }
 0x1bf   : > { %1406 = vmatprep.subr.bf16.mxu1 %v1770_v0 }
 0x284   : > { %v833_v21 = vpop.f32.mrb[0].mxu1 }
 0x285   : > { %v834_v22 = vadd.f32 %v1269_v20, %v833_v21  ;;  %v1376_v23 = vpop.f32.mrb[1].mxu1 }
 0x286   : > { %v836_v24 = vpop.f32.mrb[2].mxu1 }
 0x287   : > { %v837_v25 = vadd.f32 %v1269_v20, %v836_v24  ;;  %v1377_v26 = vpop.f32.mrb[3].mxu1  ;;  %v840_v27 = vadd.f32 %v834_v22, %v2098_v10  ;;  %v1539_v10 = vld [vmem:[#allocation11 + $0x20] sm:$0xff]  }
 0x288   : > { %1407 = vmatpush3.bf16.msra.mxu1 %v1539_v10 }
 0x289   : > { %v841_v29 = vadd.f32 %v837_v25, %v2101_v11  ;;  %v1540_v11 = vld [vmem:[#allocation11 + $0x28] sm:$0xff]   ;;  %1408 = vmatprep.subr.bf16.mxu1 %v1770_v0 }
 0x28b   : > { %v842_v30 = vpack.c.bf16 %v841_v29, %v840_v27 }
 0x28c   : > { %1409 = vmatpush3.bf16.msra.mxu1 %v1540_v11 }
 0x28d   : > { %1395 = vmatmul.mubr.bf16.vlgmr.msra.gmra.mrb[4].mxu0 %v842_v30  ;;  %1410 = vmatprep.subr.bf16.mxu1 %v1770_v0 }
 0x290   : > { %1411 = vmatpush3.bf16.msra.mxu1 %v1541_v37 }
 0x291   : > { %1412 = vmatprep.subr.bf16.mxu1 %v1770_v0  ;;  %v963_v0 = vrot.slane %v959_v51, %v672_v33 }
 0x294   : > { %1413 = vmatpush3.bf16.msra.mxu1 %v1542_v38 }
 0x360   : > { %v948_v40 = vpop.f32.mrb[4].mxu0 }
 0x361   : > { %v949_v41 = vadd.f32 %v1278_v39, %v948_v40  ;;  %v1396_v43 = vpop.f32.mrb[5].mxu0 }
 0x362   : > { %v951_v44 = vpop.f32.mrb[6].mxu0 }
 0x363   : > { %v955_v45 = vmax.f32 %v949_v41, 0.0  ;;  %v952_v46 = vadd.f32 %v1278_v39, %v951_v44  ;;  %v1397_v47 = vpop.f32.mrb[7].mxu0 }
 0x365   : > { %v957_v50 = vmin.f32 %v955_v45, 6.0  ;;  %v956_v52 = vmax.f32 %v952_v46, 0.0 }
 0x367   : > { %v958_v53 = vmin.f32 %v956_v52, 6.0  ;;  %v966_v56 = vrot.slane %v957_v50, 7  ;;  %v980_v57 = vrot.slane %v957_v50, 1  ;;  %v964_v2 = vmul.f32 %v963_v0, %v957_v50 }
 0x369   : > { %v967_v58 = vrot.slane %v958_v53, 7  ;;  %v981_v59 = vrot.slane %v958_v53, 1  ;;  %v965_v36 = vmul.f32 %v963_v0, %v958_v53 }
 0x36b   : > { %v968_v60 = vsel %vm678_vm3, %v966_v56, %v967_v58  ;;  %v969_v61 = vsel %vm678_vm3, %v967_v58, %v966_v56  ;;  %v982_v62 = vsel %vm697_vm4, %v980_v57, %v981_v59  ;;  %v983_v33 = vsel %vm697_vm4, %v981_v59, %v980_v57 }
 0x36c   : > { %v970_v42 = vsel %vm2139_vm1, 0.0, %v969_v61  ;;  %v977_v63 = vmul.f32 %v975_v55, %v968_v60  ;;  %v985_v1 = vsel %vm2143_vm2, 0.0, %v983_v33  ;;  %v990_v7 = vmul.f32 %v989_v54, %v982_v62 }
 0x36d   : > { %v976_v3 = vmul.f32 %v975_v55, %v970_v42  ;;  %v991_v4 = vmul.f32 %v989_v54, %v985_v1 }
 0x36e   : > { %v979_v5 = vadd.f32 %v977_v63, %v965_v36 }
 0x36f   : > { %v978_v6 = vadd.f32 %v976_v3, %v964_v2 }
 0x370   : > { %v993_v8 = vadd.f32 %v991_v4, %v979_v5 }
 0x371   : > { %v992_v9 = vadd.f32 %v990_v7, %v978_v6 }
 0x372   : > { %995 = vst [vmem:[#allocation2 + $0x8] sm:$0xff] %v993_v8 }
 0x373   : > { %994 = vst [vmem:[#allocation2] sm:$0xff] %v992_v9 }
 0x37a   : > { %v996_v48 = vld [vmem:[#allocation2] ss:$2 sm:$0xff] }
 0x37b   : > { %v1004_v12 = vadd.f32 %v1287_v28, %v996_v48 }
 0x37d   : > { %v1005_v49 = vmax.f32 %v1004_v12, 0.0 }
 0x37f   : > { %v1006_v13 = vmin.f32 %v1005_v49, 6.0 }
 0x381   : > { %v1007_v14 = vpack.c.bf16 %v1006_v13, %v1006_v13 }
 0x383   : > { %1415 = vmatmul.mubr.bf16.vlgmr.msra.gmra.mrb[4].mxu1 %v1007_v14 }
 0x456   : > { %v1113_v16 = vpop.f32.mrb[4].mxu1 }
 0x457   : > { %v1114_v17 = vadd.f32 %v1288_v15, %v1113_v16  ;;  %v1416_v18 = vpop.f32.mrb[5].mxu1 }
 0x458   : > { %v1116_v19 = vpop.f32.mrb[6].mxu1 }
 0x459   : > { %1119 = vst [vmem:[%s516_s19] sm:$0xff] %v1114_v17  ;;  %v1417_v20 = vpop.f32.mrb[7].mxu1 }
 0x45a   : > { %1698 = shalt.err (!%p1695_p13)
}
 0x45b   : > { %s1699_s20 = scalar_lea.hbm %s2216_s17, 128  ;;  %s1703_s10 = scalar_lea.hbm %s2309_s24, 256 }
 0x45c   : > { %p1700_p9 = scmp.ne.s32.totalorder %s2216_s17, %s1699_s20  ;;  %p1704_p4 = scmp.lt.u32.totalorder %s2216_s17, %s2309_s24 }
 0x45d   : > { %p1705_p8 = scmp.lt.u32.totalorder %s1703_s10, %s1699_s20  ;;  %p1707_p3 = scmp.lt.u32.totalorder %s1699_s20, %s2216_s17 }
 0x45e   : > { %p1701_p0 = pnand %p1700_p9, %p2014_p10 }
 0x45f   : > { %p1706_p6 = por %p1705_p8, %p1704_p4 }
 0x460   : > { %p1702_p11 = pneg %p1701_p0 }
 0x461   : > { %p1708_p5 = por %p1707_p3, %p1706_p6 }
 0x463   : > { %p1709_p7 = pnand %p1708_p5, %p1702_p11 }
 0x465   : > { %1712 = shalt.err (!%p1709_p7)
}
 0x466   : > { %1436 = dma.vmem_to_hbm [thread:$0]  (%p2014_p10), %s2218_s8, 128, %s2216_s17, %s1121_s14  }
 0x467 PF: > { %s2310_s9 = sld [smem:[#allocation17_spill]]  ;;  %s2311_s15 = sld [smem:[#allocation18_spill]] }
 0x468   : > { %p2313_p1 = scmp.ge.s32.totalorder %s1759_s28, 2 }
 0x46d   : > { %s1146_s29 = sand.u32 1, %s2310_s9   ;;  %p2312_p12 = scmp.ne.s32.totalorder %s2311_s15, 0 }
 0x46e   : > { %s1147_s16 = scalar_lea.sflag [#allocation5], %s1146_s29 }
 0x46f   : > { %p1456_p2 = pnand %p2313_p1, %p2312_p12 }
 0x471   : > { %1742 = dma.done.wait (!%p1456_p2), %s1147_s16, 128  }
 0x472   : > { %1744 = vsyncadd (!%p1456_p2), %s1147_s16, 4294967168  ;;  %p28_p13 = scmp.ge.s32.totalorder %s2004_s13, 4   ;;  %s2314_s25 = smov %s1751_s26 }
 0x473   : > { %s2315_s26 = smov %s1755_s27  ;;  %s2316_s27 = smov %s2020_s30 }
 0x474   : > { %s2317_s28 = smov %s2004_s13  ;;  %30 = sbr.rel (!%p28_p13) target bundleno = 13 (0xd), region = 133 }
 0x47b   :  { %1152 = vsyncpa [#allocation4], 1 }
 0x47c   :  { %1154 = vsyncpa [#allocation4 + $0x1], 1 }
 0x47d   :  { %1155 = vsyncpa [#allocation7], 1 }
 0x47e   :  { %1156 = vsyncpa [#allocation10], 1 }
 0x47f   :  { %1157 = vsyncpa [#allocation5], 1 }
 0x480   :  { %1159 = vsyncpa [#allocation5 + $0x1], 1 }

</bundles_post_ra>
